<compile_context>
chip_gen: v6e
topology: v6e:2x2x1
jax: 0.10.0
libtpu: 0.0.40
codegen_flags: <defaults>
</compile_context>

<pallas_src>
import jax
import jax.numpy as jnp
import numpy as np
from jax.experimental import pallas as pl
from jax.experimental.pallas import tpu as pltpu


def bahdanau_decoder_kernel(len_ref,                       # SMEM, (B,) int32
                            emb_ref, h_ref, enc_ref,       # (B,E) (B,H) (B,T,H)
                            wa_ref, ua_ref, va_ref,        # (H,H) (H,H) (1,H)
                            wg_ref, bg_ref,                # (E+2H,6H) (1,6H)
                            wo_ref, bo_ref,                # (H,C) (1,C)
                            logp_ref, hid_ref, wts_ref,    # (B,C) (B,H) (B,T)
                            ua_scratch):                   # VMEM (B,T,H)
    B, T, H = enc_ref.shape

    enc = enc_ref[...]                                   # (B, T, H)
    h = h_ref[...]                                       # (B, H) previous hidden

    # ---- Bahdanau additive attention: va . tanh(Wa h + Ua enc) --------------
    wa_h = jnp.dot(h, wa_ref[...], preferred_element_type=jnp.float32)   # (B, H)
    for b in range(B):      # B is static & tiny -> unrolled plain 2-D MXU dots
        ua_scratch[b] = jnp.dot(enc_ref[b], ua_ref[...],
                                preferred_element_type=jnp.float32)      # (T, H)
    e = jnp.tanh(wa_h[:, None, :] + ua_scratch[...])                      # (B, T, H)
    scores = jnp.sum(e * va_ref[...][None, :, :], axis=-1)                # (B, T)

    # ---- mask_3d semantics: rows with len < max(len) get -inf for t >= len --
    t_idx = jax.lax.broadcasted_iota(jnp.int32, (B, T), 1)
    b_idx = jax.lax.broadcasted_iota(jnp.int32, (B, T), 0)
    max_len = len_ref[0]
    for b in range(1, B):
        max_len = jnp.maximum(max_len, len_ref[b])
    for b in range(B):
        lb = len_ref[b]
        row_mask = jnp.logical_and(
            b_idx == b, jnp.logical_and(lb < max_len, t_idx >= lb))
        scores = jnp.where(row_mask, -jnp.inf, scores)

    # ---- softmax over time ---------------------------------------------------
    s_max = jnp.max(scores, axis=-1, keepdims=True)
    p = jnp.exp(scores - s_max)
    weights = p / jnp.sum(p, axis=-1, keepdims=True)                      # (B, T)

    # ---- context = weights @ encoder_outputs ---------------------------------
    context = jnp.sum(weights[:, :, None] * enc, axis=1)                  # (B, H)

    # ---- GRU cell, single step, fused gate matmul ----------------------------
    # [emb | context | h] @ blockdiag(W_ih^T, W_hh^T) = [gi | gh]  (one MXU push)
    x_all = jnp.concatenate([emb_ref[...], context, h], axis=-1)          # (B, E+2H)
    g = jnp.dot(x_all, wg_ref[...],
                preferred_element_type=jnp.float32) + bg_ref[...]         # (B, 6H)
    i_r, i_z, i_n = g[:, 0:H], g[:, H:2 * H], g[:, 2 * H:3 * H]
    h_r, h_z, h_n = g[:, 3 * H:4 * H], g[:, 4 * H:5 * H], g[:, 5 * H:6 * H]
    r = jax.nn.sigmoid(i_r + h_r)
    z = jax.nn.sigmoid(i_z + h_z)
    n = jnp.tanh(i_n + r * h_n)
    h_new = (1.0 - z) * n + z * h                                         # (B, H)

    # ---- output head: Linear + log_softmax ------------------------------------
    logits = jnp.dot(h_new, wo_ref[...],
                     preferred_element_type=jnp.float32) + bo_ref[...]    # (B, C)
    l_max = jnp.max(logits, axis=-1, keepdims=True)
    sh = logits - l_max
    logp = sh - jnp.log(jnp.sum(jnp.exp(sh), axis=-1, keepdims=True))

    logp_ref[...] = logp
    hid_ref[...] = h_new
    wts_ref[...] = weights


def bahdanau_decoder_forward(input_tokens, prev_hidden, encoder_outputs,
                             seq_len, params):
    """input_tokens: (B,) int32, prev_hidden: (B,H), encoder_outputs: (B,T,H),
    seq_len: (B,) int32.  Returns (log_probs (B,C), hidden (B,H), weights (B,T))."""
    B, T, H = encoder_outputs.shape
    E = params["embedding"].shape[1]
    C = params["w_out"].shape[1]

    # Glue: embedding gather (padding_idx=0 row is zero).
    emb = params["embedding"][input_tokens].astype(jnp.float32)           # (B, E)

    # Fuse the two GRU projections into one matmul:
    #   [x_cat | h] @ [[W_ih^T, 0], [0, W_hh^T]] = [gi | gh]
    w_ih, w_hh = params["w_ih"], params["w_hh"]           # (E+H, 3H), (H, 3H)
    w_gru = jnp.concatenate(
        [jnp.concatenate([w_ih, jnp.zeros((E + H, 3 * H), jnp.float32)], axis=1),
         jnp.concatenate([jnp.zeros((H, 3 * H), jnp.float32), w_hh], axis=1)],
        axis=0)                                                           # (E+2H, 6H)
    b_gru = jnp.concatenate([params["b_ih"], params["b_hh"]], axis=1)     # (1, 6H)

    grid_spec = pltpu.PrefetchScalarGridSpec(
        num_scalar_prefetch=1,            # seq_len -> SMEM scalars
        grid=(1,),                        # single invocation: no per-step overhead
        in_specs=[
            pl.BlockSpec((B, E), lambda i, sl: (0, 0)),               # embedded token
            pl.BlockSpec((B, H), lambda i, sl: (0, 0)),               # prev hidden
            pl.BlockSpec((B, T, H), lambda i, sl: (0, 0, 0)),         # encoder outputs
            pl.BlockSpec((H, H), lambda i, sl: (0, 0)),               # Wa^T
            pl.BlockSpec((H, H), lambda i, sl: (0, 0)),               # Ua^T
            pl.BlockSpec((1, H), lambda i, sl: (0, 0)),               # va
            pl.BlockSpec((E + 2 * H, 6 * H), lambda i, sl: (0, 0)),   # fused GRU W
            pl.BlockSpec((1, 6 * H), lambda i, sl: (0, 0)),           # fused GRU b
            pl.BlockSpec((H, C), lambda i, sl: (0, 0)),               # W_out^T
            pl.BlockSpec((1, C), lambda i, sl: (0, 0)),               # b_out
        ],
        out_specs=[
            pl.BlockSpec((B, C), lambda i, sl: (0, 0)),               # log-probs
            pl.BlockSpec((B, H), lambda i, sl: (0, 0)),               # new hidden
            pl.BlockSpec((B, T), lambda i, sl: (0, 0)),               # attn weights
        ],
        scratch_shapes=[pltpu.VMEM((B, T, H), jnp.float32)],
    )

    logp, hidden, weights = pl.pallas_call(
        bahdanau_decoder_kernel,
        out_shape=(
            jax.ShapeDtypeStruct((B, C), jnp.float32),
            jax.ShapeDtypeStruct((B, H), jnp.float32),
            jax.ShapeDtypeStruct((B, T), jnp.float32),
        ),
        grid_spec=grid_spec,
        compiler_params=pltpu.CompilerParams(dimension_semantics=("arbitrary",)),
    )(seq_len.astype(jnp.int32), emb,
      prev_hidden.astype(jnp.float32), encoder_outputs.astype(jnp.float32),
      params["wa"], params["ua"], params["va"], w_gru, b_gru,
      params["w_out"], params["b_out"])
    return logp, hidden, weights


def init_params(key, n_classes, embedding_dim, hidden_size):
    E, H, C = embedding_dim, hidden_size, n_classes
    keys = jax.random.split(key, 9)
    bound = 1.0 / np.sqrt(H)
    u = lambda k, shp: jax.random.uniform(k, shp, jnp.float32, -bound, bound)
    emb = jax.random.normal(keys[0], (C, E), jnp.float32)
    emb = emb.at[0].set(0.0)  # padding_idx=0
    return {
        "embedding": emb,
        # Bahdanau attention (stored transposed: apply as x @ W)
        "wa": u(keys[1], (H, H)),
        "ua": u(keys[2], (H, H)),
        "va": 0.3 * jax.random.normal(keys[3], (1, H), jnp.float32),
        # GRU (input = E+H), gates stacked [r, z, n]; stored transposed
        "w_ih": u(keys[4], (E + H, 3 * H)),
        "w_hh": u(keys[5], (H, 3 * H)),
        "b_ih": u(keys[6], (1, 3 * H)),
        "b_hh": u(keys[7], (1, 3 * H)),
        # character_distribution: Linear(H, C), stored transposed
        "w_out": u(keys[8], (H, C)),
        "b_out": jnp.zeros((1, C), jnp.float32),
    }


def reference_forward(input_tokens, prev_hidden, encoder_outputs, seq_len, params):
    """Pure-JAX mirror of BahdanauDecoder.forward (for correctness check)."""
    B, T, H = encoder_outputs.shape
    hp = jax.lax.Precision.HIGHEST
    # attention (bahdanau score)
    wa_h = jnp.dot(prev_hidden, params["wa"], precision=hp)               # (B, H)
    ua_e = jnp.einsum("bth,hk->btk", encoder_outputs, params["ua"], precision=hp)
    e = jnp.tanh(wa_h[:, None, :] + ua_e)
    scores = jnp.sum(e * params["va"][None, :, :], axis=-1)               # (B, T)
    # mask_3d semantics
    max_len = jnp.max(seq_len)
    t_idx = jnp.arange(T)[None, :]
    mask = (seq_len[:, None] < max_len) & (t_idx >= seq_len[:, None])
    scores = jnp.where(mask, -jnp.inf, scores)
    weights = jax.nn.softmax(scores, axis=-1)
    context = jnp.einsum("bt,bth->bh", weights, encoder_outputs, precision=hp)
    # GRU cell step
    emb = params["embedding"][input_tokens]
    x = jnp.concatenate([emb, context], axis=-1)
    gi = jnp.dot(x, params["w_ih"], precision=hp) + params["b_ih"]
    gh = jnp.dot(prev_hidden, params["w_hh"], precision=hp) + params["b_hh"]
    r = jax.nn.sigmoid(gi[:, :H] + gh[:, :H])
    z = jax.nn.sigmoid(gi[:, H:2 * H] + gh[:, H:2 * H])
    n = jnp.tanh(gi[:, 2 * H:] + r * gh[:, 2 * H:])
    h_new = (1.0 - z) * n + z * prev_hidden
    # output head
    logits = jnp.dot(h_new, params["w_out"], precision=hp) + params["b_out"]
    logp = jax.nn.log_softmax(logits, axis=-1)
    return logp, h_new, weights


if __name__ == "__main__":
    config = {
        "batch_size": 4, "decoder_hidden": 32, "decoder": "bahdanau",
        "attention_score": "bahdanau", "n_classes": 32, "embedding_dim": 32,
        "decoder_layers": 1, "decoder_dropout": 0.0, "loss": "NLL",
    }
    B, H = config["batch_size"], config["decoder_hidden"]
    E, C, T = config["embedding_dim"], config["n_classes"], 8

    key = jax.random.PRNGKey(0)
    k_params, k_tok, k_enc, k_hid = jax.random.split(key, 4)
    params = init_params(k_params, C, E, H)

    seq_len = jnp.array([8, 6, 5, 3], dtype=jnp.int32)
    input_tokens = jax.random.randint(k_tok, (B,), 1, C, dtype=jnp.int32)
    prev_hidden = 0.5 * jax.random.normal(k_hid, (B, H), jnp.float32)
    encoder_outputs = 0.5 * jax.random.normal(k_enc, (B, T, H), jnp.float32)
    # zero padded timesteps (what pad_packed_sequence would give the decoder)
    valid = (jnp.arange(T)[None, :] < seq_len[:, None])[:, :, None]
    encoder_outputs = jnp.where(valid, encoder_outputs, 0.0)

    logp, hidden, weights = jax.jit(bahdanau_decoder_forward)(
        input_tokens, prev_hidden, encoder_outputs, seq_len, params)
    jax.block_until_ready((logp, hidden, weights))

    ref_logp, ref_hidden, ref_weights = reference_forward(
        input_tokens, prev_hidden, encoder_outputs, seq_len, params)

    assert logp.shape == (B, C) and hidden.shape == (B, H) and weights.shape == (B, T)
    np.testing.assert_allclose(np.asarray(weights), np.asarray(ref_weights),
                               rtol=1e-4, atol=1e-5)
    np.testing.assert_allclose(np.asarray(hidden), np.asarray(ref_hidden),
                               rtol=1e-4, atol=1e-5)
    np.testing.assert_allclose(np.asarray(logp), np.asarray(ref_logp),
                               rtol=1e-4, atol=1e-4)

    print("KERNEL_OK")
</pallas_src>

<mosaic_0001>
module attributes {stable_mosaic.version = 11 : i64} {
  func.func @bahdanau_decoder_kernel(%arg0: i32, %arg1: memref<4xi32, #tpu.memory_space<smem>>, %arg2: memref<4x32xf32, #tpu.memory_space<vmem>>, %arg3: memref<4x32xf32, #tpu.memory_space<vmem>>, %arg4: memref<4x8x32xf32, #tpu.memory_space<vmem>>, %arg5: memref<32x32xf32, #tpu.memory_space<vmem>>, %arg6: memref<32x32xf32, #tpu.memory_space<vmem>>, %arg7: memref<1x32xf32, #tpu.memory_space<vmem>>, %arg8: memref<96x192xf32, #tpu.memory_space<vmem>>, %arg9: memref<1x192xf32, #tpu.memory_space<vmem>>, %arg10: memref<32x32xf32, #tpu.memory_space<vmem>>, %arg11: memref<1x32xf32, #tpu.memory_space<vmem>>, %arg12: memref<4x32xf32, #tpu.memory_space<vmem>>, %arg13: memref<4x32xf32, #tpu.memory_space<vmem>>, %arg14: memref<4x8xf32, #tpu.memory_space<vmem>>, %arg15: memref<4x8x32xf32, #tpu.memory_space<vmem>>) attributes {dimension_semantics = [#tpu.dimension_semantics<arbitrary>], iteration_bounds = array<i64: 1>, scalar_prefetch = 1 : i64, scratch_operands = 1 : i64, tpu.core_type = #tpu.core_type<tc>, window_params = [{pipeline_mode = #tpu.pipeline_mode<synchronous>, transform_indices = @transform_0, window_bounds = array<i64: 4, 32>}, {pipeline_mode = #tpu.pipeline_mode<synchronous>, transform_indices = @transform_1, window_bounds = array<i64: 4, 32>}, {pipeline_mode = #tpu.pipeline_mode<synchronous>, transform_indices = @transform_2, window_bounds = array<i64: 4, 8, 32>}, {pipeline_mode = #tpu.pipeline_mode<synchronous>, transform_indices = @transform_3, window_bounds = array<i64: 32, 32>}, {pipeline_mode = #tpu.pipeline_mode<synchronous>, transform_indices = @transform_4, window_bounds = array<i64: 32, 32>}, {pipeline_mode = #tpu.pipeline_mode<synchronous>, transform_indices = @transform_5, window_bounds = array<i64: 1, 32>}, {pipeline_mode = #tpu.pipeline_mode<synchronous>, transform_indices = @transform_6, window_bounds = array<i64: 96, 192>}, {pipeline_mode = #tpu.pipeline_mode<synchronous>, transform_indices = @transform_7, window_bounds = array<i64: 1, 192>}, {pipeline_mode = #tpu.pipeline_mode<synchronous>, transform_indices = @transform_8, window_bounds = array<i64: 32, 32>}, {pipeline_mode = #tpu.pipeline_mode<synchronous>, transform_indices = @transform_9, window_bounds = array<i64: 1, 32>}, {pipeline_mode = #tpu.pipeline_mode<synchronous>, transform_indices = @transform_10, window_bounds = array<i64: 4, 32>}, {pipeline_mode = #tpu.pipeline_mode<synchronous>, transform_indices = @transform_11, window_bounds = array<i64: 4, 32>}, {pipeline_mode = #tpu.pipeline_mode<synchronous>, transform_indices = @transform_12, window_bounds = array<i64: 4, 8>}]} {
    %c0 = arith.constant 0 : index
    %c0_0 = arith.constant 0 : index
    %c0_1 = arith.constant 0 : index
    %0 = vector.load %arg4[%c0, %c0_0, %c0_1] : memref<4x8x32xf32, #tpu.memory_space<vmem>>, vector<4x8x32xf32>
    %c0_2 = arith.constant 0 : index
    %c0_3 = arith.constant 0 : index
    %1 = vector.load %arg3[%c0_2, %c0_3] : memref<4x32xf32, #tpu.memory_space<vmem>>, vector<4x32xf32>
    %c0_4 = arith.constant 0 : index
    %c0_5 = arith.constant 0 : index
    %2 = vector.load %arg5[%c0_4, %c0_5] : memref<32x32xf32, #tpu.memory_space<vmem>>, vector<32x32xf32>
    %cst = arith.constant dense<0.000000e+00> : vector<4x32xf32>
    %3 = tpu.matmul %1, %2, %cst {dimension_numbers = #tpu.dot_dimension_numbers<[1], [0], [0], [1], [0, 0, 1, 1], [], []>} : vector<4x32xf32>, vector<32x32xf32>, vector<4x32xf32> -> vector<4x32xf32>
    %c0_6 = arith.constant 0 : index
    %c0_7 = arith.constant 0 : index
    %c0_8 = arith.constant 0 : index
    %4 = vector.load %arg4[%c0_6, %c0_7, %c0_8] : memref<4x8x32xf32, #tpu.memory_space<vmem>>, vector<1x8x32xf32>
    %5 = vector.shape_cast %4 : vector<1x8x32xf32> to vector<8x32xf32>
    %c0_9 = arith.constant 0 : index
    %c0_10 = arith.constant 0 : index
    %6 = vector.load %arg6[%c0_9, %c0_10] : memref<32x32xf32, #tpu.memory_space<vmem>>, vector<32x32xf32>
    %cst_11 = arith.constant dense<0.000000e+00> : vector<8x32xf32>
    %7 = tpu.matmul %5, %6, %cst_11 {dimension_numbers = #tpu.dot_dimension_numbers<[1], [0], [0], [1], [0, 0, 1, 1], [], []>} : vector<8x32xf32>, vector<32x32xf32>, vector<8x32xf32> -> vector<8x32xf32>
    %c0_12 = arith.constant 0 : index
    %c0_13 = arith.constant 0 : index
    %c0_14 = arith.constant 0 : index
    %8 = vector.load %arg15[%c0_12, %c0_13, %c0_14] : memref<4x8x32xf32, #tpu.memory_space<vmem>>, vector<1x8x32xf32>
    %9 = vector.shape_cast %8 : vector<1x8x32xf32> to vector<8x32xf32>
    %10 = vector.shape_cast %7 : vector<8x32xf32> to vector<1x8x32xf32>
    tpu.vector_store %arg15[%c0_12, %c0_13, %c0_14], %10 {strides = array<i32>} : memref<4x8x32xf32, #tpu.memory_space<vmem>>, vector<1x8x32xf32>,
    %c1 = arith.constant 1 : index
    %c0_15 = arith.constant 0 : index
    %c0_16 = arith.constant 0 : index
    %11 = vector.load %arg4[%c1, %c0_15, %c0_16] : memref<4x8x32xf32, #tpu.memory_space<vmem>>, vector<1x8x32xf32>
    %12 = vector.shape_cast %11 : vector<1x8x32xf32> to vector<8x32xf32>
    %c0_17 = arith.constant 0 : index
    %c0_18 = arith.constant 0 : index
    %13 = vector.load %arg6[%c0_17, %c0_18] : memref<32x32xf32, #tpu.memory_space<vmem>>, vector<32x32xf32>
    %cst_19 = arith.constant dense<0.000000e+00> : vector<8x32xf32>
    %14 = tpu.matmul %12, %13, %cst_19 {dimension_numbers = #tpu.dot_dimension_numbers<[1], [0], [0], [1], [0, 0, 1, 1], [], []>} : vector<8x32xf32>, vector<32x32xf32>, vector<8x32xf32> -> vector<8x32xf32>
    %c1_20 = arith.constant 1 : index
    %c0_21 = arith.constant 0 : index
    %c0_22 = arith.constant 0 : index
    %15 = vector.load %arg15[%c1_20, %c0_21, %c0_22] : memref<4x8x32xf32, #tpu.memory_space<vmem>>, vector<1x8x32xf32>
    %16 = vector.shape_cast %15 : vector<1x8x32xf32> to vector<8x32xf32>
    %17 = vector.shape_cast %14 : vector<8x32xf32> to vector<1x8x32xf32>
    tpu.vector_store %arg15[%c1_20, %c0_21, %c0_22], %17 {strides = array<i32>} : memref<4x8x32xf32, #tpu.memory_space<vmem>>, vector<1x8x32xf32>,
    %c2 = arith.constant 2 : index
    %c0_23 = arith.constant 0 : index
    %c0_24 = arith.constant 0 : index
    %18 = vector.load %arg4[%c2, %c0_23, %c0_24] : memref<4x8x32xf32, #tpu.memory_space<vmem>>, vector<1x8x32xf32>
    %19 = vector.shape_cast %18 : vector<1x8x32xf32> to vector<8x32xf32>
    %c0_25 = arith.constant 0 : index
    %c0_26 = arith.constant 0 : index
    %20 = vector.load %arg6[%c0_25, %c0_26] : memref<32x32xf32, #tpu.memory_space<vmem>>, vector<32x32xf32>
    %cst_27 = arith.constant dense<0.000000e+00> : vector<8x32xf32>
    %21 = tpu.matmul %19, %20, %cst_27 {dimension_numbers = #tpu.dot_dimension_numbers<[1], [0], [0], [1], [0, 0, 1, 1], [], []>} : vector<8x32xf32>, vector<32x32xf32>, vector<8x32xf32> -> vector<8x32xf32>
    %c2_28 = arith.constant 2 : index
    %c0_29 = arith.constant 0 : index
    %c0_30 = arith.constant 0 : index
    %22 = vector.load %arg15[%c2_28, %c0_29, %c0_30] : memref<4x8x32xf32, #tpu.memory_space<vmem>>, vector<1x8x32xf32>
    %23 = vector.shape_cast %22 : vector<1x8x32xf32> to vector<8x32xf32>
    %24 = vector.shape_cast %21 : vector<8x32xf32> to vector<1x8x32xf32>
    tpu.vector_store %arg15[%c2_28, %c0_29, %c0_30], %24 {strides = array<i32>} : memref<4x8x32xf32, #tpu.memory_space<vmem>>, vector<1x8x32xf32>,
    %c3 = arith.constant 3 : index
    %c0_31 = arith.constant 0 : index
    %c0_32 = arith.constant 0 : index
    %25 = vector.load %arg4[%c3, %c0_31, %c0_32] : memref<4x8x32xf32, #tpu.memory_space<vmem>>, vector<1x8x32xf32>
    %26 = vector.shape_cast %25 : vector<1x8x32xf32> to vector<8x32xf32>
    %c0_33 = arith.constant 0 : index
    %c0_34 = arith.constant 0 : index
    %27 = vector.load %arg6[%c0_33, %c0_34] : memref<32x32xf32, #tpu.memory_space<vmem>>, vector<32x32xf32>
    %cst_35 = arith.constant dense<0.000000e+00> : vector<8x32xf32>
    %28 = tpu.matmul %26, %27, %cst_35 {dimension_numbers = #tpu.dot_dimension_numbers<[1], [0], [0], [1], [0, 0, 1, 1], [], []>} : vector<8x32xf32>, vector<32x32xf32>, vector<8x32xf32> -> vector<8x32xf32>
    %c3_36 = arith.constant 3 : index
    %c0_37 = arith.constant 0 : index
    %c0_38 = arith.constant 0 : index
    %29 = vector.load %arg15[%c3_36, %c0_37, %c0_38] : memref<4x8x32xf32, #tpu.memory_space<vmem>>, vector<1x8x32xf32>
    %30 = vector.shape_cast %29 : vector<1x8x32xf32> to vector<8x32xf32>
    %31 = vector.shape_cast %28 : vector<8x32xf32> to vector<1x8x32xf32>
    tpu.vector_store %arg15[%c3_36, %c0_37, %c0_38], %31 {strides = array<i32>} : memref<4x8x32xf32, #tpu.memory_space<vmem>>, vector<1x8x32xf32>,
    %32 = vector.shape_cast %3 : vector<4x32xf32> to vector<4x1x32xf32>
    %c0_39 = arith.constant 0 : index
    %c0_40 = arith.constant 0 : index
    %c0_41 = arith.constant 0 : index
    %33 = vector.load %arg15[%c0_39, %c0_40, %c0_41] : memref<4x8x32xf32, #tpu.memory_space<vmem>>, vector<4x8x32xf32>
    %34 = vector.broadcast %32 : vector<4x1x32xf32> to vector<4x8x32xf32>
    %35 = arith.addf %34, %33 : vector<4x8x32xf32>
    %36 = math.tanh %35 : vector<4x8x32xf32>
    %c0_42 = arith.constant 0 : index
    %c0_43 = arith.constant 0 : index
    %37 = vector.load %arg7[%c0_42, %c0_43] : memref<1x32xf32, #tpu.memory_space<vmem>>, vector<1x32xf32>
    %38 = vector.shape_cast %37 : vector<1x32xf32> to vector<1x1x32xf32>
    %39 = vector.broadcast %38 : vector<1x1x32xf32> to vector<4x8x32xf32>
    %40 = arith.mulf %36, %39 : vector<4x8x32xf32>
    %cst_44 = arith.constant dense<0.000000e+00> : vector<4x8xf32>
    %41 = vector.multi_reduction <add>, %40, %cst_44 [2] : vector<4x8x32xf32> to vector<4x8xf32>
    %42 = tpu.iota {dimensions = array<i32: 1>} : vector<4x8xi32>
    %43 = tpu.iota {dimensions = array<i32: 0>} : vector<4x8xi32>
    %c0_45 = arith.constant 0 : index
    %44 = memref.load %arg1[%c0_45] : memref<4xi32, #tpu.memory_space<smem>>
    %c1_46 = arith.constant 1 : index
    %45 = memref.load %arg1[%c1_46] : memref<4xi32, #tpu.memory_space<smem>>
    %46 = arith.maxsi %44, %45 : i32
    %c2_47 = arith.constant 2 : index
    %47 = memref.load %arg1[%c2_47] : memref<4xi32, #tpu.memory_space<smem>>
    %48 = arith.maxsi %46, %47 : i32
    %c3_48 = arith.constant 3 : index
    %49 = memref.load %arg1[%c3_48] : memref<4xi32, #tpu.memory_space<smem>>
    %50 = arith.maxsi %48, %49 : i32
    %c0_49 = arith.constant 0 : index
    %51 = memref.load %arg1[%c0_49] : memref<4xi32, #tpu.memory_space<smem>>
    %c0_i32 = arith.constant 0 : i32
    %52 = vector.broadcast %c0_i32 : i32 to vector<4x8xi32>
    %53 = arith.cmpi eq, %43, %52 : vector<4x8xi32>
    %54 = arith.cmpi slt, %51, %50 : i32
    %55 = vector.broadcast %51 : i32 to vector<4x8xi32>
    %56 = arith.cmpi sge, %42, %55 : vector<4x8xi32>
    %57 = vector.broadcast %54 : i1 to vector<4x8xi1>
    %58 = arith.andi %57, %56 : vector<4x8xi1>
    %59 = arith.andi %53, %58 : vector<4x8xi1>
    %cst_50 = arith.constant 0xFF800000 : f32
    %60 = vector.broadcast %cst_50 : f32 to vector<4x8xf32>
    %61 = arith.select %59, %60, %41 : vector<4x8xi1>, vector<4x8xf32>
    %c1_51 = arith.constant 1 : index
    %62 = memref.load %arg1[%c1_51] : memref<4xi32, #tpu.memory_space<smem>>
    %c1_i32 = arith.constant 1 : i32
    %63 = vector.broadcast %c1_i32 : i32 to vector<4x8xi32>
    %64 = arith.cmpi eq, %43, %63 : vector<4x8xi32>
    %65 = arith.cmpi slt, %62, %50 : i32
    %66 = vector.broadcast %62 : i32 to vector<4x8xi32>
    %67 = arith.cmpi sge, %42, %66 : vector<4x8xi32>
    %68 = vector.broadcast %65 : i1 to vector<4x8xi1>
    %69 = arith.andi %68, %67 : vector<4x8xi1>
    %70 = arith.andi %64, %69 : vector<4x8xi1>
    %cst_52 = arith.constant 0xFF800000 : f32
    %71 = vector.broadcast %cst_52 : f32 to vector<4x8xf32>
    %72 = arith.select %70, %71, %61 : vector<4x8xi1>, vector<4x8xf32>
    %c2_53 = arith.constant 2 : index
    %73 = memref.load %arg1[%c2_53] : memref<4xi32, #tpu.memory_space<smem>>
    %c2_i32 = arith.constant 2 : i32
    %74 = vector.broadcast %c2_i32 : i32 to vector<4x8xi32>
    %75 = arith.cmpi eq, %43, %74 : vector<4x8xi32>
    %76 = arith.cmpi slt, %73, %50 : i32
    %77 = vector.broadcast %73 : i32 to vector<4x8xi32>
    %78 = arith.cmpi sge, %42, %77 : vector<4x8xi32>
    %79 = vector.broadcast %76 : i1 to vector<4x8xi1>
    %80 = arith.andi %79, %78 : vector<4x8xi1>
    %81 = arith.andi %75, %80 : vector<4x8xi1>
    %cst_54 = arith.constant 0xFF800000 : f32
    %82 = vector.broadcast %cst_54 : f32 to vector<4x8xf32>
    %83 = arith.select %81, %82, %72 : vector<4x8xi1>, vector<4x8xf32>
    %c3_55 = arith.constant 3 : index
    %84 = memref.load %arg1[%c3_55] : memref<4xi32, #tpu.memory_space<smem>>
    %c3_i32 = arith.constant 3 : i32
    %85 = vector.broadcast %c3_i32 : i32 to vector<4x8xi32>
    %86 = arith.cmpi eq, %43, %85 : vector<4x8xi32>
    %87 = arith.cmpi slt, %84, %50 : i32
    %88 = vector.broadcast %84 : i32 to vector<4x8xi32>
    %89 = arith.cmpi sge, %42, %88 : vector<4x8xi32>
    %90 = vector.broadcast %87 : i1 to vector<4x8xi1>
    %91 = arith.andi %90, %89 : vector<4x8xi1>
    %92 = arith.andi %86, %91 : vector<4x8xi1>
    %cst_56 = arith.constant 0xFF800000 : f32
    %93 = vector.broadcast %cst_56 : f32 to vector<4x8xf32>
    %94 = arith.select %92, %93, %83 : vector<4x8xi1>, vector<4x8xf32>
    %cst_57 = arith.constant dense<0xFF800000> : vector<4xf32>
    %95 = vector.multi_reduction <maximumf>, %94, %cst_57 [1] : vector<4x8xf32> to vector<4xf32>
    %96 = vector.shape_cast %95 : vector<4xf32> to vector<4x1xf32>
    %97 = vector.broadcast %96 : vector<4x1xf32> to vector<4x8xf32>
    %98 = arith.subf %94, %97 : vector<4x8xf32>
    %99 = math.exp %98 : vector<4x8xf32>
    %cst_58 = arith.constant dense<0.000000e+00> : vector<4xf32>
    %100 = vector.multi_reduction <add>, %99, %cst_58 [1] : vector<4x8xf32> to vector<4xf32>
    %101 = vector.shape_cast %100 : vector<4xf32> to vector<4x1xf32>
    %102 = vector.broadcast %101 : vector<4x1xf32> to vector<4x8xf32>
    %103 = arith.divf %99, %102 : vector<4x8xf32>
    %104 = vector.shape_cast %103 : vector<4x8xf32> to vector<4x8x1xf32>
    %105 = vector.broadcast %104 : vector<4x8x1xf32> to vector<4x8x32xf32>
    %106 = arith.mulf %105, %0 : vector<4x8x32xf32>
    %cst_59 = arith.constant dense<0.000000e+00> : vector<4x32xf32>
    %107 = vector.multi_reduction <add>, %106, %cst_59 [1] : vector<4x8x32xf32> to vector<4x32xf32>
    %c0_60 = arith.constant 0 : index
    %c0_61 = arith.constant 0 : index
    %108 = vector.load %arg2[%c0_60, %c0_61] : memref<4x32xf32, #tpu.memory_space<vmem>>, vector<4x32xf32>
    %109 = tpu.concatenate %108, %107, %1 in 1 : vector<4x32xf32>, vector<4x32xf32>, vector<4x32xf32> -> vector<4x96xf32>
    %c0_62 = arith.constant 0 : index
    %c0_63 = arith.constant 0 : index
    %110 = vector.load %arg8[%c0_62, %c0_63] : memref<96x192xf32, #tpu.memory_space<vmem>>, vector<96x192xf32>
    %cst_64 = arith.constant dense<0.000000e+00> : vector<4x192xf32>
    %111 = tpu.matmul %109, %110, %cst_64 {dimension_numbers = #tpu.dot_dimension_numbers<[1], [0], [0], [1], [0, 0, 1, 1], [], []>} : vector<4x96xf32>, vector<96x192xf32>, vector<4x192xf32> -> vector<4x192xf32>
    %c0_65 = arith.constant 0 : index
    %c0_66 = arith.constant 0 : index
    %112 = vector.load %arg9[%c0_65, %c0_66] : memref<1x192xf32, #tpu.memory_space<vmem>>, vector<1x192xf32>
    %113 = vector.broadcast %112 : vector<1x192xf32> to vector<4x192xf32>
    %114 = arith.addf %111, %113 : vector<4x192xf32>
    %115 = vector.extract_strided_slice %114 {offsets = [0, 0], sizes = [4, 32], strides = [1, 1]} : vector<4x192xf32> to vector<4x32xf32>
    %116 = vector.extract_strided_slice %114 {offsets = [0, 32], sizes = [4, 32], strides = [1, 1]} : vector<4x192xf32> to vector<4x32xf32>
    %117 = vector.extract_strided_slice %114 {offsets = [0, 64], sizes = [4, 32], strides = [1, 1]} : vector<4x192xf32> to vector<4x32xf32>
    %118 = vector.extract_strided_slice %114 {offsets = [0, 96], sizes = [4, 32], strides = [1, 1]} : vector<4x192xf32> to vector<4x32xf32>
    %119 = vector.extract_strided_slice %114 {offsets = [0, 128], sizes = [4, 32], strides = [1, 1]} : vector<4x192xf32> to vector<4x32xf32>
    %120 = vector.extract_strided_slice %114 {offsets = [0, 160], sizes = [4, 32], strides = [1, 1]} : vector<4x192xf32> to vector<4x32xf32>
    %121 = arith.addf %115, %118 : vector<4x32xf32>
    %122 = arith.negf %121 : vector<4x32xf32>
    %123 = math.exp %122 : vector<4x32xf32>
    %cst_67 = arith.constant 1.000000e+00 : f32
    %124 = vector.broadcast %cst_67 : f32 to vector<4x32xf32>
    %125 = arith.addf %124, %123 : vector<4x32xf32>
    %126 = arith.divf %124, %125 : vector<4x32xf32>
    %127 = arith.addf %116, %119 : vector<4x32xf32>
    %128 = arith.negf %127 : vector<4x32xf32>
    %129 = math.exp %128 : vector<4x32xf32>
    %cst_68 = arith.constant 1.000000e+00 : f32
    %130 = vector.broadcast %cst_68 : f32 to vector<4x32xf32>
    %131 = arith.addf %130, %129 : vector<4x32xf32>
    %132 = arith.divf %130, %131 : vector<4x32xf32>
    %133 = arith.mulf %126, %120 : vector<4x32xf32>
    %134 = arith.addf %117, %133 : vector<4x32xf32>
    %135 = math.tanh %134 : vector<4x32xf32>
    %cst_69 = arith.constant 1.000000e+00 : f32
    %136 = vector.broadcast %cst_69 : f32 to vector<4x32xf32>
    %137 = arith.subf %136, %132 : vector<4x32xf32>
    %138 = arith.mulf %137, %135 : vector<4x32xf32>
    %139 = arith.mulf %132, %1 : vector<4x32xf32>
    %140 = arith.addf %138, %139 : vector<4x32xf32>
    %c0_70 = arith.constant 0 : index
    %c0_71 = arith.constant 0 : index
    %141 = vector.load %arg10[%c0_70, %c0_71] : memref<32x32xf32, #tpu.memory_space<vmem>>, vector<32x32xf32>
    %cst_72 = arith.constant dense<0.000000e+00> : vector<4x32xf32>
    %142 = tpu.matmul %140, %141, %cst_72 {dimension_numbers = #tpu.dot_dimension_numbers<[1], [0], [0], [1], [0, 0, 1, 1], [], []>} : vector<4x32xf32>, vector<32x32xf32>, vector<4x32xf32> -> vector<4x32xf32>
    %c0_73 = arith.constant 0 : index
    %c0_74 = arith.constant 0 : index
    %143 = vector.load %arg11[%c0_73, %c0_74] : memref<1x32xf32, #tpu.memory_space<vmem>>, vector<1x32xf32>
    %144 = vector.broadcast %143 : vector<1x32xf32> to vector<4x32xf32>
    %145 = arith.addf %142, %144 : vector<4x32xf32>
    %cst_75 = arith.constant dense<0xFF800000> : vector<4xf32>
    %146 = vector.multi_reduction <maximumf>, %145, %cst_75 [1] : vector<4x32xf32> to vector<4xf32>
    %147 = vector.shape_cast %146 : vector<4xf32> to vector<4x1xf32>
    %148 = vector.broadcast %147 : vector<4x1xf32> to vector<4x32xf32>
    %149 = arith.subf %145, %148 : vector<4x32xf32>
    %150 = math.exp %149 : vector<4x32xf32>
    %cst_76 = arith.constant dense<0.000000e+00> : vector<4xf32>
    %151 = vector.multi_reduction <add>, %150, %cst_76 [1] : vector<4x32xf32> to vector<4xf32>
    %152 = vector.shape_cast %151 : vector<4xf32> to vector<4x1xf32>
    %153 = math.log %152 : vector<4x1xf32>
    %154 = vector.broadcast %153 : vector<4x1xf32> to vector<4x32xf32>
    %155 = arith.subf %149, %154 : vector<4x32xf32>
    %c0_77 = arith.constant 0 : index
    %c0_78 = arith.constant 0 : index
    %156 = vector.load %arg12[%c0_77, %c0_78] : memref<4x32xf32, #tpu.memory_space<vmem>>, vector<4x32xf32>
    tpu.vector_store %arg12[%c0_77, %c0_78], %155 {strides = array<i32>} : memref<4x32xf32, #tpu.memory_space<vmem>>, vector<4x32xf32>,
    %c0_79 = arith.constant 0 : index
    %c0_80 = arith.constant 0 : index
    %157 = vector.load %arg13[%c0_79, %c0_80] : memref<4x32xf32, #tpu.memory_space<vmem>>, vector<4x32xf32>
    tpu.vector_store %arg13[%c0_79, %c0_80], %140 {strides = array<i32>} : memref<4x32xf32, #tpu.memory_space<vmem>>, vector<4x32xf32>,
    %c0_81 = arith.constant 0 : index
    %c0_82 = arith.constant 0 : index
    %158 = vector.load %arg14[%c0_81, %c0_82] : memref<4x8xf32, #tpu.memory_space<vmem>>, vector<4x8xf32>
    tpu.vector_store %arg14[%c0_81, %c0_82], %103 {strides = array<i32>} : memref<4x8xf32, #tpu.memory_space<vmem>>, vector<4x8xf32>,
    return
  }
  func.func @transform_0(%arg0: i32, %arg1: memref<4xi32, #tpu.memory_space<smem>>) -> (i32, i32) {
    %c0_i32 = arith.constant 0 : i32
    %c0_i32_0 = arith.constant 0 : i32
    %c0_i32_1 = arith.constant 0 : i32
    return %c0_i32, %c0_i32_0 : i32, i32
  }
  func.func @transform_1(%arg0: i32, %arg1: memref<4xi32, #tpu.memory_space<smem>>) -> (i32, i32) {
    %c0_i32 = arith.constant 0 : i32
    %c0_i32_0 = arith.constant 0 : i32
    %c0_i32_1 = arith.constant 0 : i32
    return %c0_i32, %c0_i32_0 : i32, i32
  }
  func.func @transform_2(%arg0: i32, %arg1: memref<4xi32, #tpu.memory_space<smem>>) -> (i32, i32, i32) {
    %c0_i32 = arith.constant 0 : i32
    %c0_i32_0 = arith.constant 0 : i32
    %c0_i32_1 = arith.constant 0 : i32
    %c0_i32_2 = arith.constant 0 : i32
    return %c0_i32, %c0_i32_0, %c0_i32_1 : i32, i32, i32
  }
  func.func @transform_3(%arg0: i32, %arg1: memref<4xi32, #tpu.memory_space<smem>>) -> (i32, i32) {
    %c0_i32 = arith.constant 0 : i32
    %c0_i32_0 = arith.constant 0 : i32
    %c0_i32_1 = arith.constant 0 : i32
    return %c0_i32, %c0_i32_0 : i32, i32
  }
  func.func @transform_4(%arg0: i32, %arg1: memref<4xi32, #tpu.memory_space<smem>>) -> (i32, i32) {
    %c0_i32 = arith.constant 0 : i32
    %c0_i32_0 = arith.constant 0 : i32
    %c0_i32_1 = arith.constant 0 : i32
    return %c0_i32, %c0_i32_0 : i32, i32
  }
  func.func @transform_5(%arg0: i32, %arg1: memref<4xi32, #tpu.memory_space<smem>>) -> (i32, i32) {
    %c0_i32 = arith.constant 0 : i32
    %c0_i32_0 = arith.constant 0 : i32
    %c0_i32_1 = arith.constant 0 : i32
    return %c0_i32, %c0_i32_0 : i32, i32
  }
  func.func @transform_6(%arg0: i32, %arg1: memref<4xi32, #tpu.memory_space<smem>>) -> (i32, i32) {
    %c0_i32 = arith.constant 0 : i32
    %c0_i32_0 = arith.constant 0 : i32
    %c0_i32_1 = arith.constant 0 : i32
    return %c0_i32, %c0_i32_0 : i32, i32
  }
  func.func @transform_7(%arg0: i32, %arg1: memref<4xi32, #tpu.memory_space<smem>>) -> (i32, i32) {
    %c0_i32 = arith.constant 0 : i32
    %c0_i32_0 = arith.constant 0 : i32
    %c0_i32_1 = arith.constant 0 : i32
    return %c0_i32, %c0_i32_0 : i32, i32
  }
  func.func @transform_8(%arg0: i32, %arg1: memref<4xi32, #tpu.memory_space<smem>>) -> (i32, i32) {
    %c0_i32 = arith.constant 0 : i32
    %c0_i32_0 = arith.constant 0 : i32
    %c0_i32_1 = arith.constant 0 : i32
    return %c0_i32, %c0_i32_0 : i32, i32
  }
  func.func @transform_9(%arg0: i32, %arg1: memref<4xi32, #tpu.memory_space<smem>>) -> (i32, i32) {
    %c0_i32 = arith.constant 0 : i32
    %c0_i32_0 = arith.constant 0 : i32
    %c0_i32_1 = arith.constant 0 : i32
    return %c0_i32, %c0_i32_0 : i32, i32
  }
  func.func @transform_10(%arg0: i32, %arg1: memref<4xi32, #tpu.memory_space<smem>>) -> (i32, i32) {
    %c0_i32 = arith.constant 0 : i32
    %c0_i32_0 = arith.constant 0 : i32
    %c0_i32_1 = arith.constant 0 : i32
    return %c0_i32, %c0_i32_0 : i32, i32
  }
  func.func @transform_11(%arg0: i32, %arg1: memref<4xi32, #tpu.memory_space<smem>>) -> (i32, i32) {
    %c0_i32 = arith.constant 0 : i32
    %c0_i32_0 = arith.constant 0 : i32
    %c0_i32_1 = arith.constant 0 : i32
    return %c0_i32, %c0_i32_0 : i32, i32
  }
  func.func @transform_12(%arg0: i32, %arg1: memref<4xi32, #tpu.memory_space<smem>>) -> (i32, i32) {
    %c0_i32 = arith.constant 0 : i32
    %c0_i32_0 = arith.constant 0 : i32
    %c0_i32_1 = arith.constant 0 : i32
    return %c0_i32, %c0_i32_0 : i32, i32
  }
}

</mosaic_0001>

<bundles_post_ra>
// kernel: bahdanau_decoder_forward.1
= control target key start
LH: loop header
LB: loop body
LE: loop exit
PB: predicated region body
PF: predicated region fallthrough
CT: control target
= control target key end

     0   :  { %s1647_s0 = inlined_call_operand.vmem [shape: s32[4], index: 0, kind: input, shape index: {}]   ;;  %s1648_s1 = inlined_call_operand.vmem [shape: f32[4,32], index: 1, kind: input, shape index: {}]   ;;  %s1649_s2 = inlined_call_operand.vmem [shape: f32[4,32], index: 2, kind: input, shape index: {}]   ;;  %s1650_s3 = inlined_call_operand.vmem [shape: f32[4,8,32], index: 3, kind: input, shape index: {}]   ;;  %s1651_s4 = inlined_call_operand.vmem [shape: f32[32,32], index: 4, kind: input, shape index: {}]   ;;  %s1652_s5 = inlined_call_operand.vmem [shape: f32[32,32], index: 5, kind: input, shape index: {}]   ;;  %s1653_s6 = inlined_call_operand.vmem [shape: f32[1,32], index: 6, kind: input, shape index: {}]   ;;  %s1654_s7 = inlined_call_operand.vmem [shape: f32[96,192], index: 7, kind: input, shape index: {}]   ;;  %s1655_s8 = inlined_call_operand.vmem [shape: f32[1,192], index: 8, kind: input, shape index: {}]   ;;  %s1656_s9 = inlined_call_operand.vmem [shape: f32[32,32], index: 9, kind: input, shape index: {}]   ;;  %s1657_s10 = inlined_call_operand.vmem [shape: f32[1,32], index: 10, kind: input, shape index: {}]   ;;  %s1658_s11 = inlined_call_operand.hbm [shape: f32[4,32], index: 11, kind: output, shape index: {0}]   ;;  %s1659_s12 = inlined_call_operand.hbm [shape: f32[4,32], index: 12, kind: output, shape index: {1}]   ;;  %s1660_s13 = inlined_call_operand.hbm [shape: f32[4,8], index: 13, kind: output, shape index: {2}]  }
   0x1   :  { %s19_s27 = sshll.u32 %s1647_s0, 4  ;;  %s20_s27 = int_to_ptr.vmem [resolvable:$true] %s19_s27 }
   0x2   :  { %s1149_s28 = scalar_lea.vmem %s20_s27, 16  ;;  %p1154_p1 = scmp.lt.s32.totalorder %s20_s27, %s20_s27 }
   0x3   :  { %p1150_p0 = scmp.ne.s32.totalorder %s20_s27, %s1149_s28  ;;  %p1155_p2 = scmp.lt.s32.totalorder %s1149_s28, %s1149_s28 }
   0x5   :  { %p1156_p3 = por %p1155_p2, %p1154_p1 }
   0x7   :  { %p1157_p4 = pnand %p1156_p3, %p1150_p0 }
   0x9   :  { %1160 = shalt.err (!%p1157_p4)  }
   0xa   :  { %s1227_s29 = smov [#allocation4]  }
   0xb   :  { %22 = dma.vmem_to_smem %s20_s27, 16, %s1227_s29, [#allocation3] }
   0xc   :  { %1221 = dma.done.wait [#allocation3], 16 }
   0xd   :  { %1222 = vsyncadd [#allocation3], 4294967280 }
   0xe   :  { %24 = sfence }
   0xf   :  { %25 = vsyncpa [#allocation6], 0  ;;  %v55_v0 = vld [vmem:[%s1651_s4 + $0x18] sm:$0xff]  ;;  %v1228_v2 = vmov 0.0   ;;  %v54_v3 = vld [vmem:[%s1651_s4 + $0x10] sm:$0xff] }
  0x10   :  { %v134_v1 = vld [vmem:[%s1652_s5 + $0x18] sm:$0xff]  ;;  %1047 = vmatprep.subr.mxu0 %v1228_v2  ;;  %1058 = vmatprep.subr.mxu1 %v1228_v2  ;;  %v133_v4 = vld [vmem:[%s1652_s5 + $0x10] sm:$0xff]  ;;  %v53_v5 = vld [vmem:[%s1651_s4 + $0x8] sm:$0xff] }
  0x11   :  { %1048 = vmatpush3.msra.mxu0 %v55_v0  ;;  %1059 = vmatpush3.msra.mxu1 %v134_v1  ;;  %v132_v6 = vld [vmem:[%s1652_s5 + $0x8] sm:$0xff] }
  0x12   :  { %1049 = vmatprep.subr.mxu0 %v1228_v2  ;;  %1060 = vmatprep.subr.mxu1 %v1228_v2 }
  0x13   :  { %1050 = vmatpush3.msra.mxu0 %v54_v3  ;;  %1061 = vmatpush3.msra.mxu1 %v133_v4 }
  0x14   :  { %26 = vsyncpa [#allocation8], 0  ;;  %1051 = vmatprep.subr.mxu0 %v1228_v2  ;;  %1062 = vmatprep.subr.mxu1 %v1228_v2  ;;  %v52_v7 = vld [vmem:[%s1651_s4] sm:$0xff]  ;;  %vm1662_vm0 = vcmask 261120   ;;  %vm1229_vm1 = vmmov 0   ;;  %v1371_v11 = vld [vmem:[%s1650_s3 + $0x8] sm:$0xff]  ;;  %v456_v16 = vlaneseq }
  0x15   :  { %1052 = vmatpush3.msra.mxu0 %v53_v5  ;;  %1063 = vmatpush3.msra.mxu1 %v132_v6  ;;  %v131_v8 = vld [vmem:[%s1652_s5] sm:$0xff]  ;;  %v1376_v12 = vld [vmem:[%s1650_s3 + $0x10] sm:$0xff]  ;;  %v1395_v13 = vld [vmem:[%s1650_s3 + $0x18] sm:$0xff]  ;;  %v1230_v14 = vmov 1966171168   ;;  %s1425_s18 = sld [smem:[#allocation4 + $0x1]] }
  0x16   :  { %1053 = vmatprep.subr.mxu0 %v1228_v2  ;;  %1064 = vmatprep.subr.mxu1 %v1228_v2  ;;  %v1345_v9 = vld [vmem:[%s1649_s2] sm:$0xf]  ;;  %v454_v15 = vunpack.c.l.s4 %v1230_v14  ;;  %v1404_v18 = vshrl.u32 %v456_v16, 7  ;;  %s1428_s19 = sld [smem:[#allocation4 + $0x2]]  ;;  %v533_v63 = vand.u32 127, %v456_v16  ;;  %vm1661_vm6 = vcmask 1041409  }
  0x17   :  { %v1350_v10 = vld [vmem:[%s1650_s3] sm:$0xff]  ;;  %1054 = vmatpush3.msra.mxu0 %v52_v7  ;;  %1055 = vmatprep.mubr.msk.f32.mxu0 %vm1229_vm1, %v1228_v2  ;;  %s1432_s21 = sld [smem:[#allocation4 + $0x3]]  ;;  %vm577_vm14 = vcmask 1042434   ;;  %s1231_s2 = smov 64   ;;  %v713_v5 = vld [vmem:[%s1654_s7 + $0x58] sm:$0xff] }
  0x18   :  { %1065 = vmatpush3.msra.mxu1 %v131_v8  ;;  %1066 = vmatprep.mubr.msk.f32.mxu1 %vm1229_vm1, %v1228_v2  ;;  %v455_v17 = vunpack.c.0.s8 %v454_v15  ;;  %v1408_v23 = vsub.s32 0, %v1404_v18  ;;  %v1008_v46 = vld [vmem:[%s1653_s6] ss:$0 sm:$0xff]  ;;  %s536_s6 = sld [smem:[#allocation4]]  ;;  %vm546_vm4 = vcmp.eq.s32.totalorder %v1404_v18, 0  ;;  %vm583_vm15 = vcmp.eq.s32.totalorder %v1404_v18, 1 }
  0x19   :  { %1056 = vmatmul.mubr.msk.f32.vlgmr.msra.gmra.mxu0 %vm1662_vm0, %v1345_v9  ;;  %1067 = vmatmul.mubr.msk.f32.vlgmr.msra.gmra.mxu1 %vm1662_vm0, %v1350_v10 }
  0x1a   :  { %1069 = vmatprep.subr.mxu0 %v1228_v2  ;;  %1080 = vmatprep.subr.mxu1 %v1228_v2  ;;  %v458_v19 = vsub.s32 %v455_v17, %v1404_v18 }
  0x1b   :  { %1070 = vmatpush3.msra.mxu0 %v134_v1  ;;  %1081 = vmatpush3.msra.mxu1 %v134_v1  ;;  %v585_v7 = vstv %s1425_s18 }
  0x1c   :  { %1071 = vmatprep.subr.mxu0 %v1228_v2  ;;  %1082 = vmatprep.subr.mxu1 %v1228_v2  ;;  %v595_v14 = vstv %s1428_s19  ;;  %vm1458_vm7 = vcmp.ge.s32.totalorder %v533_v63, %v585_v7  ;;  %v711_v7 = vld [vmem:[%s1654_s7 + $0x48] sm:$0xff] }
  0x1d   :  { %1072 = vmatpush3.msra.mxu0 %v133_v4  ;;  %1083 = vmatpush3.msra.mxu1 %v133_v4  ;;  %vm1466_vm9 = vcmp.ge.s32.totalorder %v533_v63, %v595_v14  ;;  %v709_v14 = vld [vmem:[%s1654_s7 + $0x38] sm:$0xff] }
  0x1e   :  { %1073 = vmatprep.subr.mxu0 %v1228_v2  ;;  %1084 = vmatprep.subr.mxu1 %v1228_v2  ;;  %p538_p5 = scmp.gt.s32.totalorder %s536_s6, %s1425_s18  ;;  %v548_v0 = vstv %s536_s6 }
  0x1f   :  { %1074 = vmatpush3.msra.mxu0 %v132_v6  ;;  %1085 = vmatpush3.msra.mxu1 %v132_v6  ;;  %vm1441_vm2 = vcmp.ge.s32.totalorder %v533_v63, %v548_v0  ;;  %v717_v0 = vld [vmem:[%s1654_s7 + $0x78] sm:$0xff] }
  0x20   :  { %1075 = vmatprep.subr.mxu0 %v1228_v2  ;;  %1086 = vmatprep.subr.mxu1 %v1228_v2  ;;  %s539_s20 = scalar_select %p538_p5, %s536_s6, %s1425_s18 }
  0x21   :  { %1076 = vmatpush3.msra.mxu0 %v131_v8  ;;  %1077 = vmatprep.mubr.msk.f32.mxu0 %vm1229_vm1, %v1228_v2 }
  0x22   :  { %1087 = vmatpush3.msra.mxu1 %v131_v8  ;;  %1088 = vmatprep.mubr.msk.f32.mxu1 %vm1229_vm1, %v1228_v2  ;;  %p541_p6 = scmp.gt.s32.totalorder %s539_s20, %s1428_s19 }
  0x23   :  { %1078 = vmatmul.mubr.msk.f32.vlgmr.msra.gmra.mxu0 %vm1662_vm0, %v1371_v11  ;;  %1089 = vmatmul.mubr.msk.f32.vlgmr.msra.gmra.mxu1 %vm1662_vm0, %v1376_v12 }
  0x24   :  { %1091 = vmatprep.subr.mxu0 %v1228_v2  ;;  %1099 = vmatprep.mubr.msk.f32.mxu0 %vm1229_vm1, %v1228_v2  ;;  %s1689_s20 = smov (!%p541_p6, %s539_s20), %s1428_s19 }
  0x25   :  { %1092 = vmatpush3.msra.mxu0 %v134_v1  ;;  %806 = vmatprep.mubr.f32.mxu1 %v1228_v2  ;;  %p544_p7 = scmp.gt.s32.totalorder %s1689_s20, %s1432_s21 }
  0x26   :  { %1093 = vmatprep.subr.mxu0 %v1228_v2 }
  0x27   :  { %1094 = vmatpush3.msra.mxu0 %v133_v4  ;;  %s1691_s20 = smov (!%p544_p7, %s1689_s20), %s1432_s21  ;;  %v714_v4 = vld [vmem:[%s1654_s7 + $0x60] sm:$0xff] }
  0x28   :  { %1095 = vmatprep.subr.mxu0 %v1228_v2  ;;  %p547_p8 = scmp.lt.s32.totalorder %s536_s6, %s1691_s20  ;;  %p584_p9 = scmp.lt.s32.totalorder %s1425_s18, %s1691_s20 }
  0x29   :  { %1096 = vmatpush3.msra.mxu0 %v132_v6  ;;  %p594_p10 = scmp.lt.s32.totalorder %s1428_s19, %s1691_s20  ;;  %p604_p11 = scmp.lt.s32.totalorder %s1432_s21, %s1691_s20  ;;  %v561_v6 = vsub.s32 %v533_v63, %v1404_v18 }
  0x2a   :  { %1097 = vmatprep.subr.mxu0 %v1228_v2  ;;  %s550_s22 = scalar_select %p547_p8, 1, 0 }
  0x2b   :  { %1098 = vmatpush3.msra.mxu0 %v131_v8  ;;  %s587_s23 = scalar_select %p584_p9, 1, 0 }
  0x2c   :  { %1100 = vmatmul.mubr.msk.f32.vlgmr.msra.gmra.mxu0 %vm1662_vm0, %v1395_v13  ;;  %1102 = vmatprep.subr.mxu0 %v1228_v2  ;;  %v551_v1 = vstv %s550_s22  ;;  %s597_s24 = scalar_select %p594_p10, 1, 0 }
  0x2d   :  { %1110 = vmatprep.mubr.msk.f32.mxu0 %vm1229_vm1, %v1228_v2  ;;  %s607_s25 = scalar_select %p604_p11, 1, 0  ;;  %vm1445_vm3 = vcmp.eq.s32.totalorder %v551_v1, 1  ;;  %v588_v8 = vstv %s587_s23  ;;  %v716_v1 = vld [vmem:[%s1654_s7 + $0x70] sm:$0xff] }
  0x2e   :  { %v598_v15 = vstv %s597_s24  ;;  %vm553_vm5 = vmand %vm1445_vm3, %vm1441_vm2  ;;  %vm1462_vm8 = vcmp.eq.s32.totalorder %v588_v8, 1  ;;  %vm579_vm2 = vcmask 1043459   ;;  %vm593_vm3 = vcmp.eq.s32.totalorder %v1404_v18, 2  ;;  %v710_v8 = vld [vmem:[%s1654_s7 + $0x40] sm:$0xff]  ;;  %s1234_s19 = smov [#allocation7]  }
  0x2f   :  { %vm1470_vm10 = vcmp.eq.s32.totalorder %v598_v15, 1  ;;  %vm1474_vm11 = vmand %vm546_vm4, %vm553_vm5  ;;  %vm603_vm5 = vcmp.eq.s32.totalorder %v1404_v18, 3  ;;  %v708_v15 = vld [vmem:[%s1654_s7 + $0x30] sm:$0xff]  ;;  %s975_s20 = sshll.u32 %s1234_s19, 4  ;;  %s976_s20 = int_to_ptr.vmem [resolvable:$true] %s975_s20 }
  0x30   :  { %vm590_vm1 = vmand %vm1462_vm8, %vm1458_vm7  ;;  %p1166_p13 = scmp.lt.s32.totalorder %s976_s20, %s976_s20 }
  0x31   :  { %vm600_vm4 = vmand %vm1470_vm10, %vm1466_vm9  ;;  %vm613_vm9 = vcmask 60416  }
  0x32   :  { %vm591_vm7 = vmand %vm583_vm15, %vm590_vm1  ;;  %vm738_vm15 = vcmask 785408  }
  0x33   :  { %vm601_vm8 = vmand %vm593_vm3, %vm600_vm4 }
  0xd9   :  { %v126_v20 = vpop.f32.mrf.mxu0  ;;  %v204_v21 = vpop.f32.mrf.mxu1 }
  0xda   :  { %v459_v22 = vrot.slane %v126_v20, %v458_v19  ;;  %208 = vst.msk [vmem:[#allocation2] sm:$0xff] %vm1662_vm0, %v204_v21  ;;  %v608_v20 = vstv %s607_s25 }
  0xdb   :  { %v1057_v24 = vpop.f32.mrf.mxu0  ;;  %v1068_v25 = vpop.f32.mrf.mxu1  ;;  %vm1482_vm13 = vcmp.eq.s32.totalorder %v608_v20, 1  ;;  %v704_v20 = vld [vmem:[%s1654_s7 + $0x10] sm:$0xff] }
  0xdc   :  { %v467_v26 = vrot.slane %v459_v22, %v458_v19  ;;  %v460_v29 = vcombine.high %v459_v22, %v459_v22 }
  0xde   :  { %v484_v27 = vrot.slane %v467_v26, %v1408_v23  ;;  %v474_v35 = vrot.slane %v460_v29, %v458_v19  ;;  %v475_v36 = vcombine.high %v467_v26, %v467_v26  ;;  %v605_v19 = vstv %s1432_s21  ;;  %s1161_s21 = scalar_lea.vmem %s976_s20, 64 }
  0xdf   :  { %vm1478_vm12 = vcmp.ge.s32.totalorder %v533_v63, %v605_v19  ;;  %v718_v63 = vld [vmem:[%s1654_s7 + $0x80] sm:$0xff]  ;;  %v705_v19 = vld [vmem:[%s1654_s7 + $0x18] sm:$0xff]  ;;  %p1162_p12 = scmp.ne.s32.totalorder %s976_s20, %s1161_s21  ;;  %p1167_p0 = scmp.lt.s32.totalorder %s1161_s21, %s1161_s21 }
  0xe0   :  { %v488_v37 = vrot.slane %v474_v35, %v1408_v23  ;;  %v492_v38 = vrot.slane %v475_v36, %v1408_v23  ;;  %v476_v45 = vcombine.high %v474_v35, %v474_v35 }
  0xe1   :  { %v477_v28 = vld [vmem:[#allocation2] sm:$0xff]  ;;  %p1168_p1 = por %p1167_p0, %p1166_p13 }
  0xe2   :  { %v501_v30 = vadd.f32 %v484_v27, %v477_v28  ;;  %v496_v49 = vrot.slane %v476_v45, %v1408_v23 }
  0xe3   :  { %v284_v31 = vpop.f32.mrf.mxu0  ;;  %v365_v32 = vpop.f32.mrf.mxu1  ;;  %p1169_p2 = pnand %p1168_p1, %p1162_p12 }
  0xe4   :  { %289 = vst.msk [vmem:[#allocation2 + $0x8] sm:$0xff] %vm1662_vm0, %v284_v31  ;;  %370 = vst.msk [vmem:[#allocation2 + $0x10] sm:$0xff] %vm1662_vm0, %v365_v32  ;;  %1123 = vtanh.f32 %v501_v30 }
  0xe5   :  { %v1079_v33 = vpop.f32.mrf.mxu0  ;;  %v1090_v34 = vpop.f32.mrf.mxu1 }
  0xeb   :  { %v479_v39 = vld [vmem:[#allocation2 + $0x10] sm:$0xff]  ;;  %v478_v40 = vld [vmem:[#allocation2 + $0x8] sm:$0xff] }
  0xec   :  { %v446_v41 = vpop.f32.mrf.mxu0  ;;  %v503_v42 = vadd.f32 %v492_v38, %v479_v39  ;;  %v502_v43 = vadd.f32 %v488_v37, %v478_v40 }
  0xed   :  { %451 = vst.msk [vmem:[#allocation2 + $0x18] sm:$0xff] %vm1662_vm0, %v446_v41 }
  0xee   :  { %v1101_v44 = vpop.f32.mrf.mxu0  ;;  %1125 = vtanh.f32 %v503_v42 }
  0xef   :  { %1127 = vtanh.f32 %v502_v43 }
  0xf1   :  { %v1124_v47 = vpop.eup %1123 }
  0xf2   :  { %v516_v48 = vmul.f32 %v1124_v47, %v1008_v46  ;;  %v634_v47 = vsub.s32 1, %v1404_v18 }
  0xf4   :  { %v520_v50 = vsel %vm1662_vm0, %v516_v48, 0.0  ;;  %v480_v51 = vld [vmem:[#allocation2 + $0x18] sm:$0xff] }
  0xf5   :  { %521 = vadd.xlane.f32.xlu0 %v520_v50  ;;  %v504_v52 = vadd.f32 %v496_v49, %v480_v51 }
  0xf7   :  { %1129 = vtanh.f32 %v504_v52  ;;  %v641_v52 = vsub.s32 2, %v1404_v18 }
  0xfb   :  { %v1126_v53 = vpop.eup %1125 }
  0xfc   :  { %v1128_v54 = vpop.eup %1127  ;;  %v518_v55 = vmul.f32 %v1126_v53, %v1008_v46 }
  0xfd   :  { %v517_v56 = vmul.f32 %v1128_v54, %v1008_v46  ;;  %v648_v54 = vsub.s32 3, %v1404_v18 }
  0xfe   :  { %v526_v57 = vsel %vm1662_vm0, %v518_v55, 0.0 }
  0xff   :  { %527 = vadd.xlane.f32.xlu1 %v526_v57  ;;  %v523_v58 = vsel %vm1662_vm0, %v517_v56, 0.0  ;;  %v725_v56 = vld [vmem:[%s1654_s7 + $0xb8] sm:$0xff]  ;;  %v724_v57 = vld [vmem:[%s1654_s7 + $0xb0] sm:$0xff] }
 0x100   :  { %524 = vadd.xlane.f32.xlu0 %v523_v58  ;;  %v723_v58 = vld [vmem:[%s1654_s7 + $0xa8] sm:$0xff]  ;;  %750 = vmatprep.subr.mxu1 %v725_v56 }
 0x101   :  { %751 = vmatpush1.msra.mxu1 %v724_v57 }
 0x102   :  { %752 = vmatprep.subr.mxu1 %v723_v58 }
 0x104   :  { %v1130_v59 = vpop.eup %1129 }
 0x105   :  { %v519_v60 = vmul.f32 %v1130_v59, %v1008_v46  ;;  %v722_v59 = vld [vmem:[%s1654_s7 + $0xa0] sm:$0xff] }
 0x106   :  { %753 = vmatpush1.msra.mxu1 %v722_v59 }
 0x107   :  { %v529_v61 = vsel %vm1662_vm0, %v519_v60, 0.0  ;;  %v721_v60 = vld [vmem:[%s1654_s7 + $0x98] sm:$0xff] }
 0x108   :  { %530 = vadd.xlane.f32.xlu1 %v529_v61  ;;  %v720_v61 = vld [vmem:[%s1654_s7 + $0x90] sm:$0xff]  ;;  %754 = vmatprep.subr.mxu1 %v721_v60  ;;  %v685_v60 = vld [vmem:[%s1648_s1] sm:$0xf]  ;;  %s1233_s1 = smov 96  }
 0x109   :  { %755 = vmatpush1.msra.mxu1 %v720_v61 }
 0x17e   :  { %v522_v62 = vpop.xlane.xlu0 %521 }
 0x17f   :  { %v562_v24 = vrot.slane %v522_v62, %v561_v6  ;;  %v719_v62 = vld [vmem:[%s1654_s7 + $0x88] sm:$0xff] }
 0x180   :  { %756 = vmatprep.subr.mxu1 %v719_v62 }
 0x181   :  { %757 = vmatpush1.msra.mxu1 %v718_v63 }
 0x182   :  { %758 = vmatprep.subr.mxu1 %v717_v0 }
 0x183   :  { %759 = vmatpush1.msra.mxu1 %v716_v1  ;;  %v726_v1 = vld [vmem:[%s1655_s8] sm:$0x3] }
 0x188   :  { %v528_v16 = vpop.xlane.xlu1 %527 }
 0x189   :  { %v525_v3 = vpop.xlane.xlu0 %524  ;;  %v570_v27 = vrot.slane %v528_v16, %v561_v6  ;;  %v707_v16 = vld [vmem:[%s1654_s7 + $0x28] sm:$0xff] }
 0x18a   :  { %v566_v17 = vrot.slane %v525_v3, %v561_v6  ;;  %v715_v3 = vld [vmem:[%s1654_s7 + $0x68] sm:$0xff] }
 0x18b   :  { %760 = vmatprep.subr.mxu1 %v715_v3  ;;  %v731_v3 = vrot.slane %v726_v1, %v1408_v23 }
 0x18c   :  { %v576_v31 = vsel %vm1661_vm6, %v566_v17, %v562_v24  ;;  %vm610_vm6 = vmand %vm1482_vm13, %vm1478_vm12  ;;  %761 = vmatpush1.msra.mxu1 %v714_v4  ;;  %v706_v17 = vld [vmem:[%s1654_s7 + $0x20] sm:$0xff]  ;;  %vm1685_vm12 = vcmask 1041409   ;;  %vm700_vm13 = vcmask 523264   ;;  %v735_v4 = vrot.slane %v726_v1, %v634_v47 }
 0x18d   :  { %v578_v34 = vsel %vm577_vm14, %v570_v27, %v576_v31  ;;  %vm611_vm0 = vmand %vm603_vm5, %vm610_vm6  ;;  %762 = vmatprep.subr.mxu1 %v713_v5 }
 0x191   :  { %v531_v32 = vpop.xlane.xlu1 %530 }
 0x192   :  { %v574_v33 = vrot.slane %v531_v32, %v561_v6  ;;  %v712_v6 = vld [vmem:[%s1654_s7 + $0x50] sm:$0xff] }
 0x193   :  { %763 = vmatpush1.msra.mxu1 %v712_v6 }
 0x194   :  { %v580_v35 = vsel %vm579_vm2, %v574_v33, %v578_v34  ;;  %764 = vmatprep.subr.mxu1 %v711_v7 }
 0x195   :  { %v582_v36 = vsel %vm1474_vm11, -inf, %v580_v35  ;;  %765 = vmatpush1.msra.mxu1 %v710_v8 }
 0x196   :  { %v592_v37 = vsel %vm591_vm7, -inf, %v582_v36  ;;  %766 = vmatprep.subr.mxu1 %v709_v14 }
 0x197   :  { %v602_v38 = vsel %vm601_vm8, -inf, %v592_v37  ;;  %767 = vmatpush1.msra.mxu1 %v708_v15 }
 0x198   :  { %v612_v39 = vsel %vm611_vm0, -inf, %v602_v38  ;;  %768 = vmatprep.subr.mxu1 %v707_v16  ;;  %vm1681_vm0 = vcmask 261120  }
 0x199   :  { %v614_v40 = vsel %vm613_vm9, %v612_v39, -inf  ;;  %769 = vmatpush1.msra.mxu1 %v706_v17  ;;  %vm1682_vm6 = vmmov %vm1681_vm0 }
 0x19a   :  { %615 = vmax.xlane.f32.xlu0 %v614_v40  ;;  %770 = vmatprep.subr.mxu1 %v705_v19  ;;  %vm1683_vm10 = vmmov %vm1681_vm0 }
 0x19b   :  { %771 = vmatpush1.msra.mxu1 %v704_v20  ;;  %vm1684_vm11 = vmmov %vm1681_vm0 }
 0x19c   :  { %vm1686_vm1 = vmmov %vm1681_vm0 }
 0x223   :  { %v616_v41 = vpop.xlane.xlu0 %615 }
 0x224   :  { %v617_v42 = vsub.f32 %v612_v39, %v616_v41 }
 0x226   :  { %v618_v43 = vmul.f32 1.442695, %v617_v42  ;;  %v703_v42 = vld [vmem:[%s1654_s7 + $0x8] sm:$0xff] }
 0x227   :  { %772 = vmatprep.subr.mxu1 %v703_v42 }
 0x228   :  { %1131 = vpow2.f32 %v618_v43 }
 0x235   :  { %v1132_v44 = vpop.eup %1131 }
 0x236   :  { %v620_v45 = vsel %vm613_vm9, %v1132_v44, 0.0 }
 0x237   :  { %621 = vadd.xlane.f32.xlu1 %v620_v45 }
 0x2c0   :  { %v622_v46 = vpop.xlane.xlu1 %621 }
 0x2c1   :  { %1133 = vrcp.f32 %v622_v46 }
 0x2ce   :  { %v1134_v48 = vpop.eup %1133 }
 0x2cf   :  { %v624_v49 = vmul.f32 %v1134_v48, %v1132_v44  ;;  %v702_v44 = vld [vmem:[%s1654_s7] sm:$0xff]  ;;  %s1232_s7 = smov 32  }
 0x2d0   :  { %773 = vmatpush1.msra.mxu1 %v702_v44 }
 0x2d1   :  { %v635_v50 = vrot.slane %v624_v49, %v634_v47  ;;  %958 = vst.msk [vmem:[#allocation9] sm:$0xf] %vm613_vm9, %v624_v49  ;;  %v628_v51 = vrot.slane %v624_v49, %v1408_v23  ;;  %v642_v53 = vrot.slane %v624_v49, %v641_v52  ;;  %v649_v55 = vrot.slane %v624_v49, %v648_v54 }
 0x2d3   :  { %637 = vbcast.lane.b32.xlu1 %v635_v50, 256  ;;  %630 = vbcast.lane.b32.xlu0 %v628_v51, 256 }
 0x2d7   :  { %644 = vbcast.lane.b32.xlu1 %v642_v53, 256 }
 0x2db   :  { %651 = vbcast.lane.b32.xlu1 %v649_v55, 256 }
 0x2df   :  { %696 = vrot.lane.b32.xlu1 %v1345_v9, %s1231_s2 }
 0x345   :  { %v638_v21 = vpop.permute.xlu1 %637  ;;  %v631_v22 = vpop.permute.xlu0 %630 }
 0x346   :  { %v654_v24 = vmul.f32 %v1371_v11, %v638_v21  ;;  %v653_v25 = vmul.f32 %v631_v22, %v1350_v10  ;;  %v859_v22 = vld [vmem:[%s1656_s9 + $0x18] sm:$0xff] }
 0x347   :  { %1103 = vmatpush3.msra.mxu0 %v859_v22 }
 0x348   :  { %v664_v26 = vsel %vm1681_vm0, %v654_v24, 0.0  ;;  %v657_v27 = vsel %vm1682_vm6, %v653_v25, 0.0  ;;  %1104 = vmatprep.subr.mxu0 %v1228_v2  ;;  %v857_v24 = vld [vmem:[%s1656_s9 + $0x8] sm:$0xff]  ;;  %v856_v25 = vld [vmem:[%s1656_s9] sm:$0xff] }
 0x349   :  { %v665_v28 = vrot.slane %v664_v26, 4  ;;  %v658_v29 = vrot.slane %v657_v27, 4  ;;  %v645_v30 = vpop.permute.xlu1 %644 }
 0x34a   :  { %v655_v31 = vmul.f32 %v1376_v12, %v645_v30 }
 0x34b   :  { %v666_v32 = vadd.f32 %v665_v28, %v664_v26  ;;  %v659_v33 = vadd.f32 %v658_v29, %v657_v27 }
 0x34c   :  { %v671_v34 = vsel %vm1683_vm10, %v655_v31, 0.0 }
 0x34d   :  { %v667_v35 = vrot.slane %v666_v32, 2  ;;  %v660_v36 = vrot.slane %v659_v33, 2  ;;  %v672_v37 = vrot.slane %v671_v34, 4  ;;  %v652_v38 = vpop.permute.xlu1 %651 }
 0x34e   :  { %v656_v11 = vmul.f32 %v1395_v13, %v652_v38 }
 0x34f   :  { %v668_v10 = vadd.f32 %v667_v35, %v666_v32  ;;  %v661_v39 = vadd.f32 %v660_v36, %v659_v33  ;;  %v673_v40 = vadd.f32 %v672_v37, %v671_v34 }
 0x350   :  { %v678_v41 = vsel %vm1684_vm11, %v656_v11, 0.0  ;;  %v1015_v11 = vld [vmem:[%s1657_s10] ss:$0 sm:$0xff] }
 0x351   :  { %v674_v12 = vrot.slane %v673_v40, 2  ;;  %v679_v43 = vrot.slane %v678_v41, 4  ;;  %v669_v45 = vrot.slane %v668_v10, 1  ;;  %v662_v46 = vrot.slane %v661_v39, 1  ;;  %v697_v61 = vpop.permute.xlu1 %696 }
 0x353   :  { %v675_v13 = vadd.f32 %v674_v12, %v673_v40  ;;  %v680_v48 = vadd.f32 %v679_v43, %v678_v41  ;;  %v670_v51 = vadd.f32 %v669_v45, %v668_v10  ;;  %v663_v52 = vadd.f32 %v662_v46, %v661_v39 }
 0x355   :  { %v676_v49 = vrot.slane %v675_v13, 1  ;;  %v681_v50 = vrot.slane %v680_v48, 2  ;;  %v690_v57 = vsel %vm1685_vm12, %v670_v51, %v663_v52 }
 0x357   :  { %v682_v53 = vadd.f32 %v681_v50, %v680_v48  ;;  %v677_v54 = vadd.f32 %v676_v49, %v675_v13 }
 0x359   :  { %v683_v55 = vrot.slane %v682_v53, 1  ;;  %v691_v58 = vsel %vm577_vm14, %v677_v54, %v690_v57  ;;  %vm942_vm14 = vcmask 257024  }
 0x35b   :  { %v684_v56 = vadd.f32 %v683_v55, %v682_v53 }
 0x35d   :  { %v692_v59 = vsel %vm579_vm2, %v684_v56, %v691_v58  ;;  %vm1687_vm2 = vmmov %vm1681_vm0 }
 0x35e   :  { %693 = vrot.lane.b32.xlu0 %v692_v59, %s1232_s7 }
 0x3d0   :  { %v694_v62 = vpop.permute.xlu0 %693 }
 0x3d1   :  { %v699_v63 = vsel %vm1686_vm1, %v685_v60, %v694_v62 }
 0x3d2   :  { %v701_v0 = vsel %vm700_vm13, %v699_v63, %v697_v61 }
 0x3d3   :  { %1012 = vmatmul.mubr.msk.f32.vlgmr.msra.gmra.mxu1 %vm738_vm15, %v701_v0 }
 0x493   :  { %v808_v5 = vpop.f32.mrf.mxu1 }
 0x494   :  { %v809_v6 = vadd.f32 %v808_v5, %v731_v3 }
 0x495   :  { %v810_v7 = vpop.f32.mrf.mxu1 }
 0x496   :  { %v811_v8 = vadd.f32 %v810_v7, %v735_v4  ;;  %814 = vrot.lane.b32.xlu0 %v809_v6, %s1232_s7 }
 0x498   :  { %835 = vrot.lane.b32.xlu1 %v811_v8, %s1233_s1 }
 0x49c   :  { %825 = vrot.lane.b32.xlu1 %v811_v8, %s1232_s7 }
 0x4a0   :  { %851 = vrot.lane.b32.xlu1 %v1345_v9, %s1232_s7  ;;  %v858_v9 = vld [vmem:[%s1656_s9 + $0x10] sm:$0xff] }
 0x4a1   :  { %1105 = vmatpush3.msra.mxu0 %v858_v9 }
 0x4a2   :  { %1106 = vmatprep.subr.mxu0 %v1228_v2 }
 0x4a3   :  { %1107 = vmatpush3.msra.mxu0 %v857_v24 }
 0x4a4   :  { %1108 = vmatprep.subr.mxu0 %v1228_v2 }
 0x4a5   :  { %1109 = vmatpush3.msra.mxu0 %v856_v25 }
 0x508   :  { %v815_v14 = vpop.permute.xlu0 %814 }
 0x509   :  { %v817_v15 = vadd.f32 %v815_v14, %v809_v6 }
 0x50a   :  { %v836_v47 = vpop.permute.xlu1 %835 }
 0x50b   :  { %v1013_v16 = vmul.f32 -1.442695, %v817_v15 }
 0x50d   :  { %1135 = vpow2.f32 %v1013_v16 }
 0x50e   :  { %v826_v27 = vpop.permute.xlu1 %825 }
 0x50f   :  { %v828_v28 = vadd.f32 %v826_v27, %v809_v6 }
 0x511   :  { %v1014_v29 = vmul.f32 -1.442695, %v828_v28 }
 0x512   :  { %v852_v33 = vpop.permute.xlu1 %851 }
 0x51a   :  { %v1136_v17 = vpop.eup %1135 }
 0x51b   :  { %v821_v23 = vadd.f32 1.0, %v1136_v17 }
 0x51d   :  { %1137 = vrcp.f32 %v821_v23 }
 0x52a   :  { %v1138_v18 = vpop.eup %1137 }
 0x52b   :  { %v838_v19 = vmul.f32 %v1138_v18, %v836_v47 }
 0x52d   :  { %840 = vrot.lane.b32.xlu0 %v838_v19, %s1231_s2 }
 0x59f   :  { %v841_v20 = vpop.permute.xlu0 %840 }
 0x5a0   :  { %v843_v21 = vadd.f32 %v841_v20, %v809_v6 }
 0x5a2   :  { %1139 = vtanh.f32 %v843_v21 }
 0x5a3   :  { %1141 = vpow2.f32 %v1014_v29 }
 0x5af   :  { %v1140_v26 = vpop.eup %1139 }
 0x5b0   :  { %847 = vrot.lane.b32.xlu0 %v1140_v26, %s1233_s1  ;;  %v1142_v30 = vpop.eup %1141 }
 0x5b1   :  { %v832_v31 = vadd.f32 1.0, %v1142_v30 }
 0x5b3   :  { %1143 = vrcp.f32 %v832_v31 }
 0x5c0   :  { %v1144_v32 = vpop.eup %1143 }
 0x5c1   :  { %v845_v34 = vsub.f32 1.0, %v1144_v32  ;;  %v854_v36 = vmul.f32 %v1144_v32, %v852_v33 }
 0x622   :  { %v848_v35 = vpop.permute.xlu0 %847 }
 0x623   :  { %v850_v37 = vmul.f32 %v848_v35, %v845_v34 }
 0x625   :  { %v855_v38 = vadd.f32 %v854_v36, %v850_v37 }
 0x627   :  { %868 = vrot.lane.b32.xlu0 %v855_v38, %s1233_s1 }
 0x699   :  { %v869_v2 = vpop.permute.xlu0 %868 }
 0x69a   :  { %1111 = vmatmul.mubr.msk.f32.vlgmr.msra.gmra.mxu0 %vm1687_vm2, %v869_v2  ;;  %957 = vst.msk [vmem:[#allocation7] sm:$0xf] %vm942_vm14, %v869_v2 }
 0x75a   :  { %v938_v10 = vpop.f32.mrf.mxu0 }
 0x75b   :  { %v939_v39 = vadd.f32 %v1015_v11, %v938_v10 }
 0x75c   :  { %v1112_v40 = vpop.f32.mrf.mxu0 }
 0x75d   :  { %v943_v41 = vsel %vm942_vm14, %v939_v39, -inf }
 0x75e   :  { %944 = vmax.xlane.f32.xlu1 %v943_v41 }
 0x7e7   :  { %v945_v42 = vpop.xlane.xlu1 %944 }
 0x7e8   :  { %v946_v12 = vsub.f32 %v939_v39, %v945_v42 }
 0x7ea   :  { %v947_v43 = vmul.f32 1.442695, %v946_v12 }
 0x7ec   :  { %1145 = vpow2.f32 %v947_v43 }
 0x7f9   :  { %v1146_v44 = vpop.eup %1145 }
 0x7fa   :  { %v949_v45 = vsel %vm942_vm14, %v1146_v44, 0.0 }
 0x7fb   :  { %950 = vadd.xlane.f32.xlu0 %v949_v45 }
 0x7fc   :  { %1172 = shalt.err (!%p1169_p2)
}
 0x7fd   :  { %978 = dma.vmem_to_hbm [thread:$0]  %s976_s20, 64, %s1659_s12, [#allocation8]  }
 0x7fe   :  { %s1235_s23 = smov [#allocation9]  }
 0x7ff   :  { %s985_s24 = sshll.u32 %s1235_s23, 4  ;;  %s986_s24 = int_to_ptr.vmem [resolvable:$true] %s985_s24 }
 0x800   :  { %s1181_s25 = scalar_lea.vmem %s986_s24, 64  ;;  %p1186_p4 = scmp.lt.s32.totalorder %s986_s24, %s986_s24 }
 0x801   :  { %p1182_p3 = scmp.ne.s32.totalorder %s986_s24, %s1181_s25  ;;  %p1187_p5 = scmp.lt.s32.totalorder %s1181_s25, %s1181_s25 }
 0x803   :  { %p1188_p6 = por %p1187_p5, %p1186_p4 }
 0x805   :  { %p1189_p7 = pnand %p1188_p6, %p1182_p3 }
 0x807   :  { %1192 = shalt.err (!%p1189_p7)
}
 0x808   :  { %988 = dma.vmem_to_hbm [thread:$0]  %s986_s24, 64, %s1660_s13, [#allocation8]  }
 0x809   :  { %s1236_s28 = smov [#allocation5]  }
 0x80a   :  { %s965_s29 = sshll.u32 %s1236_s28, 4  ;;  %s966_s29 = int_to_ptr.vmem [resolvable:$true] %s965_s29 }
 0x80b   :  { %s1201_s12 = scalar_lea.vmem %s966_s29, 64  ;;  %p1206_p9 = scmp.lt.s32.totalorder %s966_s29, %s966_s29 }
 0x80c   :  { %p1202_p8 = scmp.ne.s32.totalorder %s966_s29, %s1201_s12  ;;  %p1207_p10 = scmp.lt.s32.totalorder %s1201_s12, %s1201_s12 }
 0x80e   :  { %p1208_p11 = por %p1207_p10, %p1206_p9 }
 0x810   :  { %p1209_p12 = pnand %p1208_p11, %p1202_p8 }
 0x884   :  { %v951_v46 = vpop.xlane.xlu0 %950 }
 0x885   :  { %1147 = vlog2.f32 %v951_v46 }
 0x892   :  { %v1148_v13 = vpop.eup %1147 }
 0x893   :  { %v953_v48 = vmul.f32 0.6931472, %v1148_v13 }
 0x895   :  { %v954_v49 = vsub.f32 %v946_v12, %v953_v48 }
 0x897   :  { %955 = vst.msk [vmem:[#allocation5] sm:$0xf] %vm942_vm14, %v954_v49 }
 0x898   :  { %1212 = shalt.err (!%p1209_p12)
}
 0x899   :  { %968 = dma.vmem_to_hbm [thread:$0]  %s966_s29, 64, %s1658_s11, [#allocation6]  }
 0x89a   :  { %1223 = dma.done.wait [#allocation6], 64  }
 0x89b   :  { %1224 = vsyncadd [#allocation6], 4294967232 }
 0x89c   :  { %1225 = dma.done.wait [#allocation8], 128  }
 0x89d   :  { %1226 = vsyncadd [#allocation8], 4294967168 }
 0x89e   :  { %998 = vsyncpa [#allocation6], 1 }
 0x89f   :  { %999 = vsyncpa [#allocation8], 1 }

</bundles_post_ra>
